<compile_context>
chip_gen: v5e
topology: v5e:2x2
jax: 0.10.0
libtpu: 0.0.40
codegen_flags: <defaults>
</compile_context>

<pallas_src>
import functools

import jax
import jax.numpy as jnp
from jax.experimental import pallas as pl
from jax.experimental.pallas import tpu as pltpu


# ---------------------------------------------------------------------------
# Constants
# ---------------------------------------------------------------------------
_RGB_MEAN = (0.485, 0.456, 0.406)
_RGB_STD = (0.229, 0.224, 0.225)

# BONE colormap (OpenCV / matplotlib 'bone'), piecewise-linear, RGB order.
_B1 = 0.365079
_B2 = 0.746032


def _bone_rgb(t):
    """t in [0, 1] -> (R, G, B) in [0, 1]."""
    r = jnp.where(
        t < _B2,
        t * (0.652778 / _B2),
        0.652778 + (t - _B2) * (1.0 - 0.652778) / (1.0 - _B2),
    )
    g = jnp.where(
        t < _B1,
        t * (0.319444 / _B1),
        jnp.where(
            t < _B2,
            0.319444 + (t - _B1) * (0.777778 - 0.319444) / (_B2 - _B1),
            0.777778 + (t - _B2) * (1.0 - 0.777778) / (1.0 - _B2),
        ),
    )
    b = jnp.where(
        t < _B1,
        t * (0.444444 / _B1),
        0.444444 + (t - _B1) * (1.0 - 0.444444) / (1.0 - _B1),
    )
    return r, g, b


# ---------------------------------------------------------------------------
# Per-generation sizing: bigger W tiles on 128 MiB-VMEM chips (v5e/v6e),
# conservative on v7x (64 MiB physical).
# ---------------------------------------------------------------------------
@functools.lru_cache(maxsize=1)
def _tpu_budget():
    try:
        vmem = int(pltpu.get_tpu_info().vmem_capacity_bytes)
    except Exception:  # interpret mode / API drift -> conservative defaults
        vmem = 64 * 1024 * 1024
    if vmem >= 96 * 1024 * 1024:          # v5e / v6e (128 MiB physical VMEM)
        return 1024, 96 * 1024 * 1024
    return 512, 32 * 1024 * 1024          # v7x (64 MiB physical VMEM)


def _round_up(n, m):
    return ((n + m - 1) // m) * m


def _geometry(in_h, in_w, out_size):
    w_tile, vmem_limit = _tpu_budget()
    s_sub = _round_up(out_size, 8)              # output sublane dim
    s_lane = _round_up(out_size, 128)           # output lane dim -> unmasked vst
    h_pad = _round_up(in_h, 16)                 # bf16 sublane pair; NOT 128
    tw = min(w_tile, _round_up(in_w, 128))      # W reduction tile (mult of 128)
    w_pad = _round_up(in_w, tw)
    return s_sub, s_lane, h_pad, tw, w_pad, vmem_limit


# ---------------------------------------------------------------------------
# Bilinear interpolation matrices (half-pixel convention, cv2 INTER_LINEAR),
# zero-padded to MXU/lane-friendly sizes, cast to bf16, memoized per shape.
# ---------------------------------------------------------------------------
def _bilinear_matrix(out_size, in_size):
    i = jnp.arange(out_size, dtype=jnp.float32)
    src = (i + 0.5) * (in_size / out_size) - 0.5
    i0 = jnp.floor(src)
    w1 = src - i0
    w0 = 1.0 - w1
    i0c = jnp.clip(i0, 0, in_size - 1).astype(jnp.int32)
    i1c = jnp.clip(i0 + 1, 0, in_size - 1).astype(jnp.int32)
    return (jax.nn.one_hot(i0c, in_size, dtype=jnp.float32) * w0[:, None]
            + jax.nn.one_hot(i1c, in_size, dtype=jnp.float32) * w1[:, None])


@functools.lru_cache(maxsize=64)
def _resize_operators(out_size, in_h, in_w, s_sub, s_lane, h_pad, w_pad):
    rh = _bilinear_matrix(out_size, in_h)                                 # (S, H)
    rh = jnp.pad(rh, ((0, s_sub - out_size), (0, h_pad - in_h)))          # (S_sub, H_pad)
    rw = _bilinear_matrix(out_size, in_w)                                 # (S, W)
    rw = jnp.pad(rw, ((0, s_lane - out_size), (0, w_pad - in_w)))         # (S_lane, W_pad)
    return rh.astype(jnp.bfloat16), rw.T.astype(jnp.bfloat16)             # Rh, Rw^T


# ---------------------------------------------------------------------------
# Kernel 1: plain resize + per-channel affine.  Grid (C, KW), channel parallel.
# No colormap ops on this path (statically specialized).
# ---------------------------------------------------------------------------
def _resize_raw_kernel(scale_ref, bias_ref, rh_ref, x_ref, rwt_ref, o_ref, acc_ref):
    c = pl.program_id(0)
    k = pl.program_id(1)

    @pl.when(k == 0)
    def _init():
        acc_ref[...] = jnp.zeros_like(acc_ref)

    # bf16 x bf16 -> f32 on the MXU; cast the intermediate back to bf16 so the
    # second matmul also runs single-pass bf16.  Accumulate in f32.
    part = jnp.dot(rh_ref[...], x_ref[...], preferred_element_type=jnp.float32)
    acc_ref[...] += jnp.dot(part.astype(jnp.bfloat16), rwt_ref[...],
                            preferred_element_type=jnp.float32)

    @pl.when(k == pl.num_programs(1) - 1)
    def _finalize():
        o_ref[...] = acc_ref[...] * scale_ref[c] + bias_ref[c]


def resize_planes(planes, scale, bias, out_size):
    """Batched bilinear resize + per-channel affine for raw planes.

    planes: (C, H, W) values in [0, 255];  scale/bias: (C,) f32.
    Returns (C, out_size, out_size) f32.
    """
    planes = jnp.asarray(planes)
    C, H, W = planes.shape
    S = int(out_size)
    s_sub, s_lane, h_pad, tw, w_pad, vmem_limit = _geometry(H, W, S)
    rh, rwt = _resize_operators(S, H, W, s_sub, s_lane, h_pad, w_pad)
    # bf16 image in HBM: pixels 0..255 are exact in bf16, X DMA bytes halved.
    x = jnp.pad(planes.astype(jnp.bfloat16), ((0, 0), (0, h_pad - H), (0, w_pad - W)))

    out = pl.pallas_call(
        _resize_raw_kernel,
        out_shape=jax.ShapeDtypeStruct((C, s_sub, s_lane), jnp.float32),
        grid_spec=pltpu.PrefetchScalarGridSpec(
            num_scalar_prefetch=0,
            grid=(C, w_pad // tw),
            in_specs=[
                pl.BlockSpec(memory_space=pltpu.MemorySpace.SMEM),         # scale (C,)
                pl.BlockSpec(memory_space=pltpu.MemorySpace.SMEM),         # bias  (C,)
                pl.BlockSpec((s_sub, h_pad), lambda c, k: (0, 0),          # Rh: grid-invariant
                             pipeline_mode=pl.Buffered(1)),                #   -> single buffer
                pl.BlockSpec((None, h_pad, tw), lambda c, k: (c, 0, k)),   # X[c] W-tile
                pl.BlockSpec((tw, s_lane), lambda c, k: (k, 0)),           # Rw^T W-tile
            ],
            out_specs=pl.BlockSpec((None, s_sub, s_lane), lambda c, k: (c, 0, 0)),
            scratch_shapes=[pltpu.VMEM((s_sub, s_lane), jnp.float32)],
        ),
        compiler_params=pltpu.CompilerParams(
            dimension_semantics=("parallel", "arbitrary"),
            vmem_limit_bytes=vmem_limit,
        ),
    )(jnp.asarray(scale, jnp.float32), jnp.asarray(bias, jnp.float32), rh, x, rwt)
    return out[:, :S, :S]


# ---------------------------------------------------------------------------
# Kernel 2: fused depth + BONE(255-depth).  Grid (KW,): one W-tile of the depth
# frame is DMA'd ONCE and produces all FOUR output channels; the BONE colormap
# is evaluated once per tile (VPU work hidden under the 8 MXU matmuls).
# ---------------------------------------------------------------------------
def _depth_bone_kernel(rh_ref, x_ref, rwt_ref, o_ref, acc_ref):
    k = pl.program_id(0)

    @pl.when(k == 0)
    def _init():
        acc_ref[...] = jnp.zeros_like(acc_ref)

    x = x_ref[...]                                   # (H_pad, TW) bf16, 0..255
    rh = rh_ref[...]
    rwt = rwt_ref[...]

    # BONE colormap of (255 - depth), once per tile for all 3 channels.
    # Padded zeros map to BONE=255 garbage but are killed by the zero columns
    # of Rh (H pad) and zero rows of Rw^T (W pad).
    t = (255.0 - x.astype(jnp.float32)) * (1.0 / 255.0)
    br, bg, bb = _bone_rgb(t)
    srcs = (x,
            (br * 255.0).astype(jnp.bfloat16),
            (bg * 255.0).astype(jnp.bfloat16),
            (bb * 255.0).astype(jnp.bfloat16))
    for ci, s in enumerate(srcs):                    # unrolled: 4 x 2 bf16 matmuls
        part = jnp.dot(rh, s, preferred_element_type=jnp.float32)
        acc_ref[ci] += jnp.dot(part.astype(jnp.bfloat16), rwt,
                               preferred_element_type=jnp.float32)

    @pl.when(k == pl.num_programs(0) - 1)
    def _finalize():
        o_ref[0] = acc_ref[0] * (1.0 / 255.0)                      # depth: /255
        for ci in range(1, 4):                                     # (x/255-0.5)*2, clip
            o_ref[ci] = jnp.clip(acc_ref[ci] * (1.0 / 127.5) - 1.0, -1.0, 1.0)


def depth_bone_resize(depth, out_size):
    """Returns (4, S, S) f32: [depth/255, BONE_r, BONE_g, BONE_b of (255-depth)]."""
    depth = jnp.asarray(depth)
    H, W = depth.shape
    S = int(out_size)
    s_sub, s_lane, h_pad, tw, w_pad, vmem_limit = _geometry(H, W, S)
    rh, rwt = _resize_operators(S, H, W, s_sub, s_lane, h_pad, w_pad)
    x = jnp.pad(depth.astype(jnp.bfloat16), ((0, h_pad - H), (0, w_pad - W)))

    out = pl.pallas_call(
        _depth_bone_kernel,
        out_shape=jax.ShapeDtypeStruct((4, s_sub, s_lane), jnp.float32),
        grid_spec=pltpu.PrefetchScalarGridSpec(
            num_scalar_prefetch=0,
            grid=(w_pad // tw,),
            in_specs=[
                pl.BlockSpec((s_sub, h_pad), lambda k: (0, 0),
                             pipeline_mode=pl.Buffered(1)),         # grid-invariant Rh
                pl.BlockSpec((h_pad, tw), lambda k: (0, k)),         # depth W-tile
                pl.BlockSpec((tw, s_lane), lambda k: (k, 0)),        # Rw^T W-tile
            ],
            out_specs=pl.BlockSpec((4, s_sub, s_lane), lambda k: (0, 0, 0)),
            scratch_shapes=[pltpu.VMEM((4, s_sub, s_lane), jnp.float32)],
        ),
        compiler_params=pltpu.CompilerParams(
            # TODO(synk): single 'arbitrary' W-reduction axis -> runs on one TC on
            # v7x; a row-split parallel axis would double X DMA / colormap work on
            # single-TC chips, so the source-reuse-optimal shape is kept.
            dimension_semantics=("arbitrary",),
            vmem_limit_bytes=vmem_limit,
        ),
    )(rh, x, rwt)
    return out[:, :S, :S]


# ---------------------------------------------------------------------------
# Module wrapper
# ---------------------------------------------------------------------------
class DataTransformsPallas:
    def __init__(self, train_size):
        self.trainsize = int(train_size)

    def __call__(self, rgb, depth, cdcp_ann, pre_ann=None):
        S = self.trainsize
        rgb = jnp.asarray(rgb)
        depth = jnp.asarray(depth)
        cdcp_ann = jnp.asarray(cdcp_ann)

        # --- depth + BONE(255-depth): one fused kernel, depth frame read once.
        db = depth_bone_resize(depth, S)                              # (4, S, S)
        depth_t = db[0:1]                                             # (1, S, S)
        bone = db[1:4]                                                # (3, S, S) in [-1,1]

        # --- raw channels: batch every plane sharing a source resolution into
        #     one pallas_call (RGB Normalize expressed as per-channel affine).
        rgb_chw = jnp.transpose(rgb, (2, 0, 1))                       # (3, H, W)
        requests = []                                                 # (tag, plane, scale, bias)
        for j in range(3):
            requests.append(("rgb%d" % j, rgb_chw[j],
                             1.0 / (255.0 * _RGB_STD[j]), -_RGB_MEAN[j] / _RGB_STD[j]))
        requests.append(("cdcp", cdcp_ann, 1.0 / 255.0, 0.0))
        if pre_ann is not None:
            requests.append(("pre", jnp.asarray(pre_ann), 1.0 / 255.0, 0.0))

        groups = {}
        for item in requests:
            groups.setdefault(tuple(item[1].shape), []).append(item)
        results = {}
        for items in groups.values():
            planes = jnp.stack([p for _, p, _, _ in items], 0)
            scales = jnp.array([s for _, _, s, _ in items], jnp.float32)
            biases = jnp.array([b for _, _, _, b in items], jnp.float32)
            out = resize_planes(planes, scales, biases, S)
            for i, (tag, _, _, _) in enumerate(items):
                results[tag] = out[i]

        rgb_out = jnp.stack([results["rgb0"], results["rgb1"], results["rgb2"]], 0)
        ann_t = results["cdcp"][None]

        # --- AUTUMN colormap of (255 - depth) is affine in depth -> commutes with
        #     the resize: R=255 -> +1, G=255-depth -> 1-2*depth_t, B=0 -> -1.
        d = depth_t[0]
        autumn = jnp.stack([jnp.ones_like(d),
                            jnp.clip(1.0 - 2.0 * d, -1.0, 1.0),
                            -jnp.ones_like(d)], axis=0)               # (3, S, S)
        colored_stack = jnp.stack([autumn, bone], axis=0)             # (2, 3, S, S)

        if pre_ann is None:
            return rgb_out, depth_t, colored_stack, ann_t
        return rgb_out, depth_t, colored_stack, ann_t, results["pre"][None]


if __name__ == "__main__":
    key = jax.random.PRNGKey(0)
    k1, k2, k3, k4 = jax.random.split(key, 4)

    H_in, W_in = 24, 24
    trainsize = 16

    rgb = jnp.floor(jax.random.uniform(k1, (H_in, W_in, 3)) * 256.0).clip(0, 255)
    depth = jnp.floor(jax.random.uniform(k2, (H_in, W_in)) * 256.0).clip(0, 255)
    cdcp_ann = jnp.floor(jax.random.uniform(k3, (H_in, W_in)) * 256.0).clip(0, 255)
    pre_ann = jnp.floor(jax.random.uniform(k4, (H_in, W_in)) * 256.0).clip(0, 255)

    transforms = DataTransformsPallas(trainsize)
    outs = jax.block_until_ready(transforms(rgb, depth, cdcp_ann, pre_ann))

    rgb_o, depth_o, colored_o, ann_o, pre_o = outs
    assert rgb_o.shape == (3, trainsize, trainsize)
    assert depth_o.shape == (1, trainsize, trainsize)
    assert colored_o.shape == (2, 3, trainsize, trainsize)
    assert ann_o.shape == (1, trainsize, trainsize)
    assert pre_o.shape == (1, trainsize, trainsize)

    # Loose numerical check vs a pure-jnp f32 bilinear reference (bf16 MXU
    # operands introduce ~1e-3-relative deltas; pixel values stay exact).
    def ref_resize(plane):
        rh = _bilinear_matrix(trainsize, plane.shape[0])
        rw = _bilinear_matrix(trainsize, plane.shape[1])
        return rh @ plane.astype(jnp.float32) @ rw.T

    depth_ref = ref_resize(depth) / 255.0
    ann_ref = ref_resize(cdcp_ann) / 255.0
    assert float(jnp.max(jnp.abs(depth_o[0] - depth_ref))) < 0.05
    assert float(jnp.max(jnp.abs(ann_o[0] - ann_ref))) < 0.05

    # No-pre_ann path (original module allows pre_ann=None).
    outs4 = jax.block_until_ready(transforms(rgb, depth, cdcp_ann, None))
    assert len(outs4) == 4

    print("KERNEL_OK")
</pallas_src>

<mosaic_0001>
module attributes {stable_mosaic.version = 11 : i64} {
  func.func @_depth_bone_kernel(%arg0: i32, %arg1: memref<16x32xbf16, #tpu.memory_space<vmem>>, %arg2: memref<32x128xbf16, #tpu.memory_space<vmem>>, %arg3: memref<128x128xbf16, #tpu.memory_space<vmem>>, %arg4: memref<4x16x128xf32, #tpu.memory_space<vmem>>, %arg5: memref<4x16x128xf32, #tpu.memory_space<vmem>>) attributes {dimension_semantics = [#tpu.dimension_semantics<arbitrary>], iteration_bounds = array<i64: 1>, scalar_prefetch = 0 : i64, scratch_operands = 1 : i64, tpu.core_type = #tpu.core_type<tc>, window_params = [{pipeline_mode = #tpu.pipeline_mode<synchronous>, transform_indices = @transform_0, window_bounds = array<i64: 16, 32>}, {transform_indices = @transform_1, window_bounds = array<i64: 32, 128>}, {transform_indices = @transform_2, window_bounds = array<i64: 128, 128>}, {pipeline_mode = #tpu.pipeline_mode<synchronous>, transform_indices = @transform_3, window_bounds = array<i64: 4, 16, 128>}]} {
    %c0_i32 = arith.constant 0 : i32
    %0 = arith.cmpi eq, %arg0, %c0_i32 : i32
    %1 = arith.extui %0 : i1 to i32
    %c0_i32_0 = arith.constant 0 : i32
    %2 = arith.cmpi ne, %1, %c0_i32_0 : i32
    scf.if %2 {
      %cst_64 = arith.constant 0.000000e+00 : f32
      %109 = vector.broadcast %cst_64 : f32 to vector<4x16x128xf32>
      %c0_65 = arith.constant 0 : index
      %c0_66 = arith.constant 0 : index
      %c0_67 = arith.constant 0 : index
      %110 = vector.load %arg5[%c0_65, %c0_66, %c0_67] : memref<4x16x128xf32, #tpu.memory_space<vmem>>, vector<4x16x128xf32>
      tpu.vector_store %arg5[%c0_65, %c0_66, %c0_67], %109 {strides = array<i32>} : memref<4x16x128xf32, #tpu.memory_space<vmem>>, vector<4x16x128xf32>,
    } else {
    }
    %c0 = arith.constant 0 : index
    %c0_1 = arith.constant 0 : index
    %3 = vector.load %arg2[%c0, %c0_1] : memref<32x128xbf16, #tpu.memory_space<vmem>>, vector<32x128xbf16>
    %c0_2 = arith.constant 0 : index
    %c0_3 = arith.constant 0 : index
    %4 = vector.load %arg1[%c0_2, %c0_3] : memref<16x32xbf16, #tpu.memory_space<vmem>>, vector<16x32xbf16>
    %c0_4 = arith.constant 0 : index
    %c0_5 = arith.constant 0 : index
    %5 = vector.load %arg3[%c0_4, %c0_5] : memref<128x128xbf16, #tpu.memory_space<vmem>>, vector<128x128xbf16>
    %6 = arith.extf %3 : vector<32x128xbf16> to vector<32x128xf32>
    %cst = arith.constant 2.550000e+02 : f32
    %7 = vector.broadcast %cst : f32 to vector<32x128xf32>
    %8 = arith.subf %7, %6 : vector<32x128xf32>
    %cst_6 = arith.constant 0.00392156886 : f32
    %9 = vector.broadcast %cst_6 : f32 to vector<32x128xf32>
    %10 = arith.mulf %8, %9 : vector<32x128xf32>
    %cst_7 = arith.constant 7.460320e-01 : f32
    %11 = vector.broadcast %cst_7 : f32 to vector<32x128xf32>
    %12 = arith.cmpf olt, %10, %11 : vector<32x128xf32>
    %cst_8 = arith.constant 8.750000e-01 : f32
    %13 = vector.broadcast %cst_8 : f32 to vector<32x128xf32>
    %14 = arith.mulf %10, %13 : vector<32x128xf32>
    %cst_9 = arith.constant 7.460320e-01 : f32
    %15 = vector.broadcast %cst_9 : f32 to vector<32x128xf32>
    %16 = arith.subf %10, %15 : vector<32x128xf32>
    %cst_10 = arith.constant 3.472220e-01 : f32
    %17 = vector.broadcast %cst_10 : f32 to vector<32x128xf32>
    %18 = arith.mulf %16, %17 : vector<32x128xf32>
    %cst_11 = arith.constant 2.539680e-01 : f32
    %19 = vector.broadcast %cst_11 : f32 to vector<32x128xf32>
    %20 = arith.divf %18, %19 : vector<32x128xf32>
    %cst_12 = arith.constant 6.527780e-01 : f32
    %21 = vector.broadcast %cst_12 : f32 to vector<32x128xf32>
    %22 = arith.addf %21, %20 : vector<32x128xf32>
    %23 = arith.select %12, %14, %22 : vector<32x128xi1>, vector<32x128xf32>
    %cst_13 = arith.constant 3.650790e-01 : f32
    %24 = vector.broadcast %cst_13 : f32 to vector<32x128xf32>
    %25 = arith.cmpf olt, %10, %24 : vector<32x128xf32>
    %cst_14 = arith.constant 0.874999642 : f32
    %26 = vector.broadcast %cst_14 : f32 to vector<32x128xf32>
    %27 = arith.mulf %10, %26 : vector<32x128xf32>
    %cst_15 = arith.constant 7.460320e-01 : f32
    %28 = vector.broadcast %cst_15 : f32 to vector<32x128xf32>
    %29 = arith.cmpf olt, %10, %28 : vector<32x128xf32>
    %cst_16 = arith.constant 3.650790e-01 : f32
    %30 = vector.broadcast %cst_16 : f32 to vector<32x128xf32>
    %31 = arith.subf %10, %30 : vector<32x128xf32>
    %cst_17 = arith.constant 4.583340e-01 : f32
    %32 = vector.broadcast %cst_17 : f32 to vector<32x128xf32>
    %33 = arith.mulf %31, %32 : vector<32x128xf32>
    %cst_18 = arith.constant 3.809530e-01 : f32
    %34 = vector.broadcast %cst_18 : f32 to vector<32x128xf32>
    %35 = arith.divf %33, %34 : vector<32x128xf32>
    %cst_19 = arith.constant 3.194440e-01 : f32
    %36 = vector.broadcast %cst_19 : f32 to vector<32x128xf32>
    %37 = arith.addf %36, %35 : vector<32x128xf32>
    %cst_20 = arith.constant 7.460320e-01 : f32
    %38 = vector.broadcast %cst_20 : f32 to vector<32x128xf32>
    %39 = arith.subf %10, %38 : vector<32x128xf32>
    %cst_21 = arith.constant 2.222220e-01 : f32
    %40 = vector.broadcast %cst_21 : f32 to vector<32x128xf32>
    %41 = arith.mulf %39, %40 : vector<32x128xf32>
    %cst_22 = arith.constant 2.539680e-01 : f32
    %42 = vector.broadcast %cst_22 : f32 to vector<32x128xf32>
    %43 = arith.divf %41, %42 : vector<32x128xf32>
    %cst_23 = arith.constant 7.777780e-01 : f32
    %44 = vector.broadcast %cst_23 : f32 to vector<32x128xf32>
    %45 = arith.addf %44, %43 : vector<32x128xf32>
    %46 = arith.select %29, %37, %45 : vector<32x128xi1>, vector<32x128xf32>
    %47 = arith.select %25, %27, %46 : vector<32x128xi1>, vector<32x128xf32>
    %cst_24 = arith.constant 3.650790e-01 : f32
    %48 = vector.broadcast %cst_24 : f32 to vector<32x128xf32>
    %49 = arith.cmpf olt, %10, %48 : vector<32x128xf32>
    %cst_25 = arith.constant 1.21739125 : f32
    %50 = vector.broadcast %cst_25 : f32 to vector<32x128xf32>
    %51 = arith.mulf %10, %50 : vector<32x128xf32>
    %cst_26 = arith.constant 3.650790e-01 : f32
    %52 = vector.broadcast %cst_26 : f32 to vector<32x128xf32>
    %53 = arith.subf %10, %52 : vector<32x128xf32>
    %cst_27 = arith.constant 5.555560e-01 : f32
    %54 = vector.broadcast %cst_27 : f32 to vector<32x128xf32>
    %55 = arith.mulf %53, %54 : vector<32x128xf32>
    %cst_28 = arith.constant 6.349210e-01 : f32
    %56 = vector.broadcast %cst_28 : f32 to vector<32x128xf32>
    %57 = arith.divf %55, %56 : vector<32x128xf32>
    %cst_29 = arith.constant 4.444440e-01 : f32
    %58 = vector.broadcast %cst_29 : f32 to vector<32x128xf32>
    %59 = arith.addf %58, %57 : vector<32x128xf32>
    %60 = arith.select %49, %51, %59 : vector<32x128xi1>, vector<32x128xf32>
    %cst_30 = arith.constant 2.550000e+02 : f32
    %61 = vector.broadcast %cst_30 : f32 to vector<32x128xf32>
    %62 = arith.mulf %23, %61 : vector<32x128xf32>
    %63 = arith.truncf %62 : vector<32x128xf32> to vector<32x128xbf16>
    %cst_31 = arith.constant 2.550000e+02 : f32
    %64 = vector.broadcast %cst_31 : f32 to vector<32x128xf32>
    %65 = arith.mulf %47, %64 : vector<32x128xf32>
    %66 = arith.truncf %65 : vector<32x128xf32> to vector<32x128xbf16>
    %cst_32 = arith.constant 2.550000e+02 : f32
    %67 = vector.broadcast %cst_32 : f32 to vector<32x128xf32>
    %68 = arith.mulf %60, %67 : vector<32x128xf32>
    %69 = arith.truncf %68 : vector<32x128xf32> to vector<32x128xbf16>
    %cst_33 = arith.constant dense<0.000000e+00> : vector<16x128xf32>
    %70 = tpu.matmul %4, %3, %cst_33 {dimension_numbers = #tpu.dot_dimension_numbers<[1], [0], [0], [1], [0, 0, 1, 1], [], []>} : vector<16x32xbf16>, vector<32x128xbf16>, vector<16x128xf32> -> vector<16x128xf32>
    %c0_34 = arith.constant 0 : index
    %c0_35 = arith.constant 0 : index
    %c0_36 = arith.constant 0 : index
    %71 = vector.load %arg5[%c0_34, %c0_35, %c0_36] : memref<4x16x128xf32, #tpu.memory_space<vmem>>, vector<1x16x128xf32>
    %72 = vector.shape_cast %71 : vector<1x16x128xf32> to vector<16x128xf32>
    %73 = arith.truncf %70 : vector<16x128xf32> to vector<16x128xbf16>
    %cst_37 = arith.constant dense<0.000000e+00> : vector<16x128xf32>
    %74 = tpu.matmul %73, %5, %cst_37 {dimension_numbers = #tpu.dot_dimension_numbers<[1], [0], [0], [1], [0, 0, 1, 1], [], []>} : vector<16x128xbf16>, vector<128x128xbf16>, vector<16x128xf32> -> vector<16x128xf32>
    %75 = arith.addf %72, %74 : vector<16x128xf32>
    %c0_38 = arith.constant 0 : index
    %c0_39 = arith.constant 0 : index
    %c0_40 = arith.constant 0 : index
    %76 = vector.load %arg5[%c0_38, %c0_39, %c0_40] : memref<4x16x128xf32, #tpu.memory_space<vmem>>, vector<1x16x128xf32>
    %77 = vector.shape_cast %76 : vector<1x16x128xf32> to vector<16x128xf32>
    %78 = vector.shape_cast %75 : vector<16x128xf32> to vector<1x16x128xf32>
    tpu.vector_store %arg5[%c0_38, %c0_39, %c0_40], %78 {strides = array<i32>} : memref<4x16x128xf32, #tpu.memory_space<vmem>>, vector<1x16x128xf32>,
    %cst_41 = arith.constant dense<0.000000e+00> : vector<16x128xf32>
    %79 = tpu.matmul %4, %63, %cst_41 {dimension_numbers = #tpu.dot_dimension_numbers<[1], [0], [0], [1], [0, 0, 1, 1], [], []>} : vector<16x32xbf16>, vector<32x128xbf16>, vector<16x128xf32> -> vector<16x128xf32>
    %c1 = arith.constant 1 : index
    %c0_42 = arith.constant 0 : index
    %c0_43 = arith.constant 0 : index
    %80 = vector.load %arg5[%c1, %c0_42, %c0_43] : memref<4x16x128xf32, #tpu.memory_space<vmem>>, vector<1x16x128xf32>
    %81 = vector.shape_cast %80 : vector<1x16x128xf32> to vector<16x128xf32>
    %82 = arith.truncf %79 : vector<16x128xf32> to vector<16x128xbf16>
    %cst_44 = arith.constant dense<0.000000e+00> : vector<16x128xf32>
    %83 = tpu.matmul %82, %5, %cst_44 {dimension_numbers = #tpu.dot_dimension_numbers<[1], [0], [0], [1], [0, 0, 1, 1], [], []>} : vector<16x128xbf16>, vector<128x128xbf16>, vector<16x128xf32> -> vector<16x128xf32>
    %84 = arith.addf %81, %83 : vector<16x128xf32>
    %c1_45 = arith.constant 1 : index
    %c0_46 = arith.constant 0 : index
    %c0_47 = arith.constant 0 : index
    %85 = vector.load %arg5[%c1_45, %c0_46, %c0_47] : memref<4x16x128xf32, #tpu.memory_space<vmem>>, vector<1x16x128xf32>
    %86 = vector.shape_cast %85 : vector<1x16x128xf32> to vector<16x128xf32>
    %87 = vector.shape_cast %84 : vector<16x128xf32> to vector<1x16x128xf32>
    tpu.vector_store %arg5[%c1_45, %c0_46, %c0_47], %87 {strides = array<i32>} : memref<4x16x128xf32, #tpu.memory_space<vmem>>, vector<1x16x128xf32>,
    %cst_48 = arith.constant dense<0.000000e+00> : vector<16x128xf32>
    %88 = tpu.matmul %4, %66, %cst_48 {dimension_numbers = #tpu.dot_dimension_numbers<[1], [0], [0], [1], [0, 0, 1, 1], [], []>} : vector<16x32xbf16>, vector<32x128xbf16>, vector<16x128xf32> -> vector<16x128xf32>
    %c2 = arith.constant 2 : index
    %c0_49 = arith.constant 0 : index
    %c0_50 = arith.constant 0 : index
    %89 = vector.load %arg5[%c2, %c0_49, %c0_50] : memref<4x16x128xf32, #tpu.memory_space<vmem>>, vector<1x16x128xf32>
    %90 = vector.shape_cast %89 : vector<1x16x128xf32> to vector<16x128xf32>
    %91 = arith.truncf %88 : vector<16x128xf32> to vector<16x128xbf16>
    %cst_51 = arith.constant dense<0.000000e+00> : vector<16x128xf32>
    %92 = tpu.matmul %91, %5, %cst_51 {dimension_numbers = #tpu.dot_dimension_numbers<[1], [0], [0], [1], [0, 0, 1, 1], [], []>} : vector<16x128xbf16>, vector<128x128xbf16>, vector<16x128xf32> -> vector<16x128xf32>
    %93 = arith.addf %90, %92 : vector<16x128xf32>
    %c2_52 = arith.constant 2 : index
    %c0_53 = arith.constant 0 : index
    %c0_54 = arith.constant 0 : index
    %94 = vector.load %arg5[%c2_52, %c0_53, %c0_54] : memref<4x16x128xf32, #tpu.memory_space<vmem>>, vector<1x16x128xf32>
    %95 = vector.shape_cast %94 : vector<1x16x128xf32> to vector<16x128xf32>
    %96 = vector.shape_cast %93 : vector<16x128xf32> to vector<1x16x128xf32>
    tpu.vector_store %arg5[%c2_52, %c0_53, %c0_54], %96 {strides = array<i32>} : memref<4x16x128xf32, #tpu.memory_space<vmem>>, vector<1x16x128xf32>,
    %cst_55 = arith.constant dense<0.000000e+00> : vector<16x128xf32>
    %97 = tpu.matmul %4, %69, %cst_55 {dimension_numbers = #tpu.dot_dimension_numbers<[1], [0], [0], [1], [0, 0, 1, 1], [], []>} : vector<16x32xbf16>, vector<32x128xbf16>, vector<16x128xf32> -> vector<16x128xf32>
    %c3 = arith.constant 3 : index
    %c0_56 = arith.constant 0 : index
    %c0_57 = arith.constant 0 : index
    %98 = vector.load %arg5[%c3, %c0_56, %c0_57] : memref<4x16x128xf32, #tpu.memory_space<vmem>>, vector<1x16x128xf32>
    %99 = vector.shape_cast %98 : vector<1x16x128xf32> to vector<16x128xf32>
    %100 = arith.truncf %97 : vector<16x128xf32> to vector<16x128xbf16>
    %cst_58 = arith.constant dense<0.000000e+00> : vector<16x128xf32>
    %101 = tpu.matmul %100, %5, %cst_58 {dimension_numbers = #tpu.dot_dimension_numbers<[1], [0], [0], [1], [0, 0, 1, 1], [], []>} : vector<16x128xbf16>, vector<128x128xbf16>, vector<16x128xf32> -> vector<16x128xf32>
    %102 = arith.addf %99, %101 : vector<16x128xf32>
    %c3_59 = arith.constant 3 : index
    %c0_60 = arith.constant 0 : index
    %c0_61 = arith.constant 0 : index
    %103 = vector.load %arg5[%c3_59, %c0_60, %c0_61] : memref<4x16x128xf32, #tpu.memory_space<vmem>>, vector<1x16x128xf32>
    %104 = vector.shape_cast %103 : vector<1x16x128xf32> to vector<16x128xf32>
    %105 = vector.shape_cast %102 : vector<16x128xf32> to vector<1x16x128xf32>
    tpu.vector_store %arg5[%c3_59, %c0_60, %c0_61], %105 {strides = array<i32>} : memref<4x16x128xf32, #tpu.memory_space<vmem>>, vector<1x16x128xf32>,
    %c0_i32_62 = arith.constant 0 : i32
    %106 = arith.cmpi eq, %arg0, %c0_i32_62 : i32
    %107 = arith.extui %106 : i1 to i32
    %c0_i32_63 = arith.constant 0 : i32
    %108 = arith.cmpi ne, %107, %c0_i32_63 : i32
    scf.if %108 {
      %c0_64 = arith.constant 0 : index
      %c0_65 = arith.constant 0 : index
      %c0_66 = arith.constant 0 : index
      %109 = vector.load %arg5[%c0_64, %c0_65, %c0_66] : memref<4x16x128xf32, #tpu.memory_space<vmem>>, vector<1x16x128xf32>
      %110 = vector.shape_cast %109 : vector<1x16x128xf32> to vector<16x128xf32>
      %cst_67 = arith.constant 0.00392156886 : f32
      %111 = vector.broadcast %cst_67 : f32 to vector<16x128xf32>
      %112 = arith.mulf %110, %111 : vector<16x128xf32>
      %c0_68 = arith.constant 0 : index
      %c0_69 = arith.constant 0 : index
      %c0_70 = arith.constant 0 : index
      %113 = vector.load %arg4[%c0_68, %c0_69, %c0_70] : memref<4x16x128xf32, #tpu.memory_space<vmem>>, vector<1x16x128xf32>
      %114 = vector.shape_cast %113 : vector<1x16x128xf32> to vector<16x128xf32>
      %115 = vector.shape_cast %112 : vector<16x128xf32> to vector<1x16x128xf32>
      tpu.vector_store %arg4[%c0_68, %c0_69, %c0_70], %115 {strides = array<i32>} : memref<4x16x128xf32, #tpu.memory_space<vmem>>, vector<1x16x128xf32>,
      %c1_71 = arith.constant 1 : index
      %c0_72 = arith.constant 0 : index
      %c0_73 = arith.constant 0 : index
      %116 = vector.load %arg5[%c1_71, %c0_72, %c0_73] : memref<4x16x128xf32, #tpu.memory_space<vmem>>, vector<1x16x128xf32>
      %117 = vector.shape_cast %116 : vector<1x16x128xf32> to vector<16x128xf32>
      %cst_74 = arith.constant 0.00784313772 : f32
      %118 = vector.broadcast %cst_74 : f32 to vector<16x128xf32>
      %119 = arith.mulf %117, %118 : vector<16x128xf32>
      %cst_75 = arith.constant 1.000000e+00 : f32
      %120 = vector.broadcast %cst_75 : f32 to vector<16x128xf32>
      %121 = arith.subf %119, %120 : vector<16x128xf32>
      %cst_76 = arith.constant -1.000000e+00 : f32
      %cst_77 = arith.constant 1.000000e+00 : f32
      %122 = vector.broadcast %cst_76 : f32 to vector<16x128xf32>
      %123 = arith.maximumf %122, %121 : vector<16x128xf32>
      %124 = vector.broadcast %cst_77 : f32 to vector<16x128xf32>
      %125 = arith.minimumf %124, %123 : vector<16x128xf32>
      %c1_78 = arith.constant 1 : index
      %c0_79 = arith.constant 0 : index
      %c0_80 = arith.constant 0 : index
      %126 = vector.load %arg4[%c1_78, %c0_79, %c0_80] : memref<4x16x128xf32, #tpu.memory_space<vmem>>, vector<1x16x128xf32>
      %127 = vector.shape_cast %126 : vector<1x16x128xf32> to vector<16x128xf32>
      %128 = vector.shape_cast %125 : vector<16x128xf32> to vector<1x16x128xf32>
      tpu.vector_store %arg4[%c1_78, %c0_79, %c0_80], %128 {strides = array<i32>} : memref<4x16x128xf32, #tpu.memory_space<vmem>>, vector<1x16x128xf32>,
      %c2_81 = arith.constant 2 : index
      %c0_82 = arith.constant 0 : index
      %c0_83 = arith.constant 0 : index
      %129 = vector.load %arg5[%c2_81, %c0_82, %c0_83] : memref<4x16x128xf32, #tpu.memory_space<vmem>>, vector<1x16x128xf32>
      %130 = vector.shape_cast %129 : vector<1x16x128xf32> to vector<16x128xf32>
      %cst_84 = arith.constant 0.00784313772 : f32
      %131 = vector.broadcast %cst_84 : f32 to vector<16x128xf32>
      %132 = arith.mulf %130, %131 : vector<16x128xf32>
      %cst_85 = arith.constant 1.000000e+00 : f32
      %133 = vector.broadcast %cst_85 : f32 to vector<16x128xf32>
      %134 = arith.subf %132, %133 : vector<16x128xf32>
      %cst_86 = arith.constant -1.000000e+00 : f32
      %cst_87 = arith.constant 1.000000e+00 : f32
      %135 = vector.broadcast %cst_86 : f32 to vector<16x128xf32>
      %136 = arith.maximumf %135, %134 : vector<16x128xf32>
      %137 = vector.broadcast %cst_87 : f32 to vector<16x128xf32>
      %138 = arith.minimumf %137, %136 : vector<16x128xf32>
      %c2_88 = arith.constant 2 : index
      %c0_89 = arith.constant 0 : index
      %c0_90 = arith.constant 0 : index
      %139 = vector.load %arg4[%c2_88, %c0_89, %c0_90] : memref<4x16x128xf32, #tpu.memory_space<vmem>>, vector<1x16x128xf32>
      %140 = vector.shape_cast %139 : vector<1x16x128xf32> to vector<16x128xf32>
      %141 = vector.shape_cast %138 : vector<16x128xf32> to vector<1x16x128xf32>
      tpu.vector_store %arg4[%c2_88, %c0_89, %c0_90], %141 {strides = array<i32>} : memref<4x16x128xf32, #tpu.memory_space<vmem>>, vector<1x16x128xf32>,
      %c3_91 = arith.constant 3 : index
      %c0_92 = arith.constant 0 : index
      %c0_93 = arith.constant 0 : index
      %142 = vector.load %arg5[%c3_91, %c0_92, %c0_93] : memref<4x16x128xf32, #tpu.memory_space<vmem>>, vector<1x16x128xf32>
      %143 = vector.shape_cast %142 : vector<1x16x128xf32> to vector<16x128xf32>
      %cst_94 = arith.constant 0.00784313772 : f32
      %144 = vector.broadcast %cst_94 : f32 to vector<16x128xf32>
      %145 = arith.mulf %143, %144 : vector<16x128xf32>
      %cst_95 = arith.constant 1.000000e+00 : f32
      %146 = vector.broadcast %cst_95 : f32 to vector<16x128xf32>
      %147 = arith.subf %145, %146 : vector<16x128xf32>
      %cst_96 = arith.constant -1.000000e+00 : f32
      %cst_97 = arith.constant 1.000000e+00 : f32
      %148 = vector.broadcast %cst_96 : f32 to vector<16x128xf32>
      %149 = arith.maximumf %148, %147 : vector<16x128xf32>
      %150 = vector.broadcast %cst_97 : f32 to vector<16x128xf32>
      %151 = arith.minimumf %150, %149 : vector<16x128xf32>
      %c3_98 = arith.constant 3 : index
      %c0_99 = arith.constant 0 : index
      %c0_100 = arith.constant 0 : index
      %152 = vector.load %arg4[%c3_98, %c0_99, %c0_100] : memref<4x16x128xf32, #tpu.memory_space<vmem>>, vector<1x16x128xf32>
      %153 = vector.shape_cast %152 : vector<1x16x128xf32> to vector<16x128xf32>
      %154 = vector.shape_cast %151 : vector<16x128xf32> to vector<1x16x128xf32>
      tpu.vector_store %arg4[%c3_98, %c0_99, %c0_100], %154 {strides = array<i32>} : memref<4x16x128xf32, #tpu.memory_space<vmem>>, vector<1x16x128xf32>,
    } else {
    }
    return
  }
  func.func @transform_0(%arg0: i32) -> (i32, i32) {
    %c0_i32 = arith.constant 0 : i32
    %c0_i32_0 = arith.constant 0 : i32
    %c0_i32_1 = arith.constant 0 : i32
    return %c0_i32, %c0_i32_0 : i32, i32
  }
  func.func @transform_1(%arg0: i32) -> (i32, i32) {
    %c0_i32 = arith.constant 0 : i32
    %c0_i32_0 = arith.constant 0 : i32
    return %c0_i32, %arg0 : i32, i32
  }
  func.func @transform_2(%arg0: i32) -> (i32, i32) {
    %c0_i32 = arith.constant 0 : i32
    %c0_i32_0 = arith.constant 0 : i32
    return %arg0, %c0_i32 : i32, i32
  }
  func.func @transform_3(%arg0: i32) -> (i32, i32, i32) {
    %c0_i32 = arith.constant 0 : i32
    %c0_i32_0 = arith.constant 0 : i32
    %c0_i32_1 = arith.constant 0 : i32
    %c0_i32_2 = arith.constant 0 : i32
    return %c0_i32, %c0_i32_0, %c0_i32_1 : i32, i32, i32
  }
}

</mosaic_0001>

<bundles_post_ra>
// kernel: tpu_custom_call.1
= control target key start
LH: loop header
LB: loop body
LE: loop exit
PB: predicated region body
PF: predicated region fallthrough
CT: control target
= control target key end

     0   :  { %8 = vsyncpa [#allocation4], 0  ;;  %s887_s0 = inlined_call_operand.hbm [shape: bf16[16,32], index: 0, kind: input, shape index: {}]   ;;  %s888_s1 = inlined_call_operand.hbm [shape: bf16[32,128], index: 1, kind: input, shape index: {}]   ;;  %s889_s2 = inlined_call_operand.hbm [shape: bf16[128,128], index: 2, kind: input, shape index: {}]   ;;  %s890_s3 = inlined_call_operand.hbm [shape: f32[4,16,128], index: 3, kind: output, shape index: {}]  }
   0x1   :  { %9 = vsyncpa [#allocation7], 0 }
   0x2   :  { %10 = vsyncpa [#allocation5], 0  ;;  %s28_s14 = sshll.u32 %s888_s1, 4  ;;  %s718_s15 = smov [#allocation6]   ;;  %s29_s14 = int_to_ptr.hbm [resolvable:$true] %s28_s14 }
   0x3   :  { %s30_s16 = sshll.u32 %s718_s15, 4  ;;  %s15_s19 = sshll.u32 %s887_s0, 4  ;;  %s31_s16 = int_to_ptr.vmem [resolvable:$true] %s30_s16  ;;  %s16_s19 = int_to_ptr.hbm [resolvable:$true] %s15_s19 }
   0x4   :  { %s719_s20 = smov 64   ;;  %s720_s21 = smov 4  }
   0x5   :  { %36 = dma.hbm_to_vmem [thread:$0]  %s29_s14, 256, %s31_s16, [#allocation7], %s719_s20, %s719_s20, %s720_s21  }
   0x6   :  { %s721_s22 = smov [#allocation3]   ;;  %s41_s26 = sshll.u32 %s889_s2, 4  ;;  %s42_s26 = int_to_ptr.hbm [resolvable:$true] %s41_s26 }
   0x7   :  { %s17_s23 = sshll.u32 %s721_s22, 4  ;;  %s722_s1 = smov [#allocation8]   ;;  %s18_s23 = int_to_ptr.vmem [resolvable:$true] %s17_s23 }
   0x8   :  { %23 = dma.hbm_to_vmem [thread:$0]  %s16_s19, 128, %s18_s23, [#allocation4], %s719_s20, %s719_s20, %s720_s21  }
   0x9   :  { %s43_s27 = sshll.u32 %s722_s1, 4  ;;  %s44_s27 = int_to_ptr.vmem [resolvable:$true] %s43_s27 }
   0xa   :  { %49 = dma.hbm_to_vmem [thread:$0]  %s42_s26, 1024, %s44_s27, [#allocation7], %s719_s20, %s719_s20, %s720_s21  }
   0xb   :  { %712 = dma.done.wait [#allocation4], 128  }
   0xc   :  { %713 = vsyncadd [#allocation4], 4294967168 }
   0xd   :  { %714 = dma.done.wait [#allocation7], 1280  }
   0xe   :  { %715 = vsyncadd [#allocation7], 4294966016  ;;  %v723_v0 = vmov 0.253968   ;;  %v724_v1 = vmov 0.380953  }
   0xf   :  { %610 = vrcp.f32 %v723_v0  ;;  %v725_v2 = vmov 0.634921   ;;  %v589_v4 = vld [vmem:[#allocation6 + $0x8] sm:$0xff]  ;;  %v75_v8 = vld [vmem:[#allocation6] sm:$0xff]   ;;  %v761_v21 = vld [vmem:[#allocation3] sm:$0xff]  ;;  %vm257_vm0 = vcmask 261120  }
  0x10   :  { %612 = vrcp.f32 %v724_v1  ;;  %v77_v6 = vld [vmem:[#allocation6 + $0x8] sm:$0xff]   ;;  %267 = vmatpush.bf16.msra.mxu0 %v589_v4  ;;  %v588_v10 = vld [vmem:[#allocation6] sm:$0xff]  ;;  %v97_v16 = vunpack.c.l.bf16 %v75_v8  ;;  %v98_v20 = vunpack.c.h.bf16 %v75_v8  ;;  %s726_s0 = smov [#allocation9]   ;;  %s506_s30 = sshll.u32 %s890_s3, 4  ;;  %s507_s30 = int_to_ptr.hbm [resolvable:$true] %s506_s30 }
  0x11   :  { %614 = vrcp.f32 %v725_v2  ;;  %v99_v11 = vunpack.c.l.bf16 %v77_v6  ;;  %v100_v12 = vunpack.c.h.bf16 %v77_v6  ;;  %s504_s2 = sshll.u32 %s726_s0, 4  ;;  %s727_s4 = smov 128   ;;  %s505_s2 = int_to_ptr.vmem [resolvable:$true] %s504_s2 }
  0x12   :  { %v101_v29 = vsub.f32 255.0, %v97_v16  ;;  %v102_v30 = vsub.f32 255.0, %v98_v20  ;;  %s728_s5 = smov 8  }
  0x13   :  { %v103_v17 = vsub.f32 255.0, %v99_v11  ;;  %v104_v18 = vsub.f32 255.0, %v100_v12 }
  0x14   :  { %268 = vmatpush.bf16.msra.mxu0 %v588_v10  ;;  %v810_v8 = vmul.f32 0.003921569, %v101_v29  ;;  %v812_v10 = vmul.f32 0.003921569, %v102_v30 }
  0x15   :  { %v611_v3 = vpop.eup %610  ;;  %v763_v24 = vmul.f32 0.003921569, %v103_v17  ;;  %v765_v25 = vmul.f32 0.003921569, %v104_v18 }
  0x16   :  { %v613_v5 = vpop.eup %612  ;;  %v126_v7 = vmul.f32 0.253968, %v611_v3  ;;  %vm130_vm1 = vweird.f32 %v611_v3  ;;  %vm109_vm8 = vcmp.lt.f32.partialorder %v810_v8, 0.746032  ;;  %vm110_vm9 = vcmp.lt.f32.partialorder %v812_v10, 0.746032 }
  0x17   :  { %v758_v9 = vpop.eup %614  ;;  %v161_v13 = vmul.f32 0.380953, %v613_v5  ;;  %vm165_vm2 = vweird.f32 %v613_v5  ;;  %vm111_vm3 = vcmp.lt.f32.partialorder %v763_v24, 0.746032  ;;  %vm112_vm4 = vcmp.lt.f32.partialorder %v765_v25, 0.746032  ;;  %540 = vmatmul.msk.bf16.vlgmr.msra.gmra.mxu0 %vm257_vm0, %v761_v21 }
  0x18   :  { %v127_v14 = vsub.f32 1.0, %v126_v7  ;;  %v204_v15 = vmul.f32 0.634921, %v758_v9  ;;  %v115_v31 = vmul.f32 0.875, %v763_v24  ;;  %v116_v32 = vmul.f32 0.875, %v765_v25 }
  0x19   :  { %v162_v19 = vsub.f32 1.0, %v161_v13  ;;  %v522_v33 = vadd.f32 -0.746032, %v763_v24  ;;  %v523_v34 = vadd.f32 -0.746032, %v765_v25  ;;  %vm208_vm7 = vweird.f32 %v758_v9 }
  0x1a   :  { %v128_v22 = vmul.f32 %v611_v3, %v127_v14  ;;  %v205_v23 = vsub.f32 1.0, %v204_v15  ;;  %vm146_vm5 = vcmp.lt.f32.partialorder %v763_v24, 0.365079  ;;  %vm147_vm6 = vcmp.lt.f32.partialorder %v765_v25, 0.365079 }
  0x1b   :  { %v163_v26 = vmul.f32 %v613_v5, %v162_v19  ;;  %v150_v36 = vmul.f32 0.87499964, %v763_v24  ;;  %v151_v37 = vmul.f32 0.87499964, %v765_v25  ;;  %v123_v39 = vmul.f32 0.347222, %v522_v33 }
  0x1c   :  { %v129_v27 = vadd.f32 %v611_v3, %v128_v22  ;;  %v206_v28 = vmul.f32 %v758_v9, %v205_v23  ;;  %v124_v40 = vmul.f32 0.347222, %v523_v34  ;;  %v526_v41 = vadd.f32 -0.365079, %v763_v24 }
  0x1d   :  { %v164_v38 = vadd.f32 %v613_v5, %v163_v26  ;;  %v527_v42 = vadd.f32 -0.365079, %v765_v25  ;;  %v177_v44 = vmul.f32 0.222222, %v522_v33  ;;  %v178_v45 = vmul.f32 0.222222, %v523_v34 }
  0x1e   :  { %v777_v35 = vsel %vm130_vm1, %v611_v3, %v129_v27  ;;  %v158_v48 = vmul.f32 0.458334, %v526_v41  ;;  %v207_v49 = vadd.f32 %v758_v9, %v206_v28  ;;  %v197_v53 = vmul.f32 1.2173913, %v763_v24 }
  0x1f   :  { %v787_v43 = vsel %vm165_vm2, %v613_v5, %v164_v38  ;;  %v134_v46 = vmul.f32 %v777_v35, %v123_v39  ;;  %v135_v47 = vmul.f32 %v777_v35, %v124_v40  ;;  %v159_v50 = vmul.f32 0.458334, %v527_v42 }
  0x20   :  { %v181_v51 = vmul.f32 %v177_v44, %v777_v35  ;;  %v182_v52 = vmul.f32 %v178_v45, %v777_v35  ;;  %v169_v56 = vmul.f32 %v787_v43, %v158_v48  ;;  %v201_v57 = vmul.f32 0.555556, %v526_v41 }
  0x21   :  { %v138_v54 = vadd.f32 0.652778, %v134_v46  ;;  %v139_v55 = vadd.f32 0.652778, %v135_v47  ;;  %v170_v58 = vmul.f32 %v787_v43, %v159_v50  ;;  %v202_v61 = vmul.f32 0.555556, %v527_v42 }
  0x22   :  { %v185_v59 = vadd.f32 0.777778, %v181_v51  ;;  %v186_v60 = vadd.f32 0.777778, %v182_v52  ;;  %v173_v0 = vadd.f32 0.319444, %v169_v56  ;;  %v804_v1 = vsel %vm208_vm7, %v758_v9, %v207_v49 }
  0x23   :  { %v142_v62 = vsel %vm111_vm3, %v115_v31, %v138_v54  ;;  %v143_v63 = vsel %vm112_vm4, %v116_v32, %v139_v55  ;;  %v174_v4 = vadd.f32 0.319444, %v170_v58  ;;  %v212_v5 = vmul.f32 %v804_v1, %v201_v57  ;;  %v845_v47 = vld [vmem:[#allocation8 + $0x30] sm:$0xff] }
  0x24   :  { %v224_v2 = vmul.f32 255.0, %v142_v62  ;;  %v225_v3 = vmul.f32 255.0, %v143_v63  ;;  %v189_v6 = vsel %vm111_vm3, %v173_v0, %v185_v59  ;;  %v213_v7 = vmul.f32 %v804_v1, %v202_v61 }
  0x25   :  { %v190_v12 = vsel %vm112_vm4, %v174_v4, %v186_v60  ;;  %v193_v9 = vsel %vm146_vm5, %v150_v36, %v189_v6  ;;  %v216_v13 = vadd.f32 0.444444, %v212_v5  ;;  %v198_v15 = vmul.f32 1.2173913, %v765_v25 }
  0x26   :  { %v227_v11 = vpack.c.bf16 %v225_v3, %v224_v2  ;;  %v194_v14 = vsel %vm147_vm6, %v151_v37, %v190_v12  ;;  %v230_v16 = vmul.f32 255.0, %v193_v9  ;;  %v217_v17 = vadd.f32 0.444444, %v213_v7  ;;  %v837_v37 = vld [vmem:[#allocation8 + $0x38] sm:$0xff] }
  0x27   :  { %v220_v18 = vsel %vm146_vm5, %v197_v53, %v216_v13  ;;  %v231_v19 = vmul.f32 255.0, %v194_v14  ;;  %v520_v20 = vadd.f32 -0.746032, %v810_v8  ;;  %v521_v22 = vadd.f32 -0.746032, %v812_v10  ;;  %326 = vmatpush.bf16.msra.mxu1 %v837_v37  ;;  %362 = vmatpush.bf16.msra.mxu3 %v837_v37  ;;  %v595_v14 = vld [vmem:[#allocation8 + $0x20] sm:$0xff] }
  0x28   :  { %350 = vmatpush.bf16.msra.mxu2 %v227_v11  ;;  %v827_v26 = vmul.f32 255.0, %v220_v18  ;;  %v113_v27 = vmul.f32 0.875, %v810_v8  ;;  %v114_v28 = vmul.f32 0.875, %v812_v10  ;;  %vm144_vm10 = vcmp.lt.f32.partialorder %v810_v8, 0.365079  ;;  %v594_v18 = vld [vmem:[#allocation8 + $0x18] sm:$0xff] }
  0x29   :  { %v233_v23 = vpack.c.bf16 %v231_v19, %v230_v16  ;;  %v121_v29 = vmul.f32 0.347222, %v520_v20  ;;  %v122_v30 = vmul.f32 0.347222, %v521_v22  ;;  %vm145_vm11 = vcmp.lt.f32.partialorder %v812_v10, 0.365079 }
  0x2a   :  { %v524_v24 = vadd.f32 -0.365079, %v810_v8  ;;  %v525_v31 = vadd.f32 -0.365079, %v812_v10  ;;  %v175_v34 = vmul.f32 0.222222, %v520_v20  ;;  %v221_v38 = vsel %vm147_vm6, %v198_v15, %v217_v17 }
  0x2b   :  { %386 = vmatpush.bf16.msrb.mxu0 %v233_v23  ;;  %v132_v32 = vmul.f32 %v777_v35, %v121_v29  ;;  %v133_v33 = vmul.f32 %v777_v35, %v122_v30  ;;  %v176_v36 = vmul.f32 0.222222, %v521_v22  ;;  %v148_v39 = vmul.f32 0.87499964, %v810_v8  ;;  %327 = vmatpush.bf16.msra.mxu1 %v845_v47  ;;  %v592_v19 = vld [vmem:[#allocation8 + $0x8] sm:$0xff]  ;;  %v591_v20 = vld [vmem:[#allocation8] sm:$0xff] }
  0x2c   :  { %v156_v40 = vmul.f32 0.458334, %v524_v24  ;;  %v157_v41 = vmul.f32 0.458334, %v525_v31  ;;  %v179_v45 = vmul.f32 %v175_v34, %v777_v35  ;;  %v149_v48 = vmul.f32 0.87499964, %v812_v10  ;;  %363 = vmatpush.bf16.msra.mxu3 %v845_v47 }
  0x2d   :  { %v136_v42 = vadd.f32 0.652778, %v132_v32  ;;  %v137_v44 = vadd.f32 0.652778, %v133_v33  ;;  %v180_v46 = vmul.f32 %v176_v36, %v777_v35  ;;  %v199_v50 = vmul.f32 0.555556, %v524_v24 }
  0x2e   :  { %v167_v25 = vmul.f32 %v787_v43, %v156_v40  ;;  %v168_v49 = vmul.f32 %v787_v43, %v157_v41  ;;  %v183_v35 = vadd.f32 0.777778, %v179_v45  ;;  %v237_v58 = vmul.f32 255.0, %v221_v38  ;;  %v596_v43 = vld [vmem:[#allocation8 + $0x28] sm:$0xff] }
  0x2f   :  { %v140_v51 = vsel %vm109_vm8, %v113_v27, %v136_v42  ;;  %v141_v52 = vsel %vm110_vm9, %v114_v28, %v137_v44  ;;  %v184_v53 = vadd.f32 0.777778, %v180_v46  ;;  %v195_v59 = vmul.f32 1.2173913, %v810_v8  ;;  %328 = vmatpush.bf16.msra.mxu1 %v596_v43 }
  0x30   :  { %v222_v54 = vmul.f32 255.0, %v140_v51  ;;  %v223_v55 = vmul.f32 255.0, %v141_v52  ;;  %v171_v56 = vadd.f32 0.319444, %v167_v25  ;;  %v172_v57 = vadd.f32 0.319444, %v168_v49  ;;  %364 = vmatpush.bf16.msra.mxu3 %v596_v43 }
  0x31   :  { %v200_v60 = vmul.f32 0.555556, %v525_v31  ;;  %v210_v61 = vmul.f32 %v804_v1, %v199_v50  ;;  %v196_v2 = vmul.f32 1.2173913, %v812_v10  ;;  %v239_v12 = vpack.c.bf16 %v237_v58, %v827_v26  ;;  %v593_v10 = vld [vmem:[#allocation8 + $0x10] sm:$0xff] }
  0x32   :  { %v226_v62 = vpack.c.bf16 %v223_v55, %v222_v54  ;;  %v187_v63 = vsel %vm109_vm8, %v171_v56, %v183_v35  ;;  %v188_v0 = vsel %vm110_vm9, %v172_v57, %v184_v53 }
  0x33   :  { %v191_v3 = vsel %vm144_vm10, %v148_v39, %v187_v63  ;;  %v192_v4 = vsel %vm145_vm11, %v149_v48, %v188_v0  ;;  %v211_v5 = vmul.f32 %v804_v1, %v200_v60  ;;  %v214_v6 = vadd.f32 0.444444, %v210_v61  ;;  %329 = vmatpush.bf16.msra.mxu1 %v595_v14 }
  0x34   :  { %351 = vmatpush.bf16.msra.mxu2 %v226_v62  ;;  %v228_v7 = vmul.f32 255.0, %v191_v3  ;;  %v229_v11 = vmul.f32 255.0, %v192_v4  ;;  %365 = vmatpush.bf16.msra.mxu3 %v595_v14 }
  0x35   :  { %v215_v9 = vadd.f32 0.444444, %v211_v5  ;;  %v218_v13 = vsel %vm144_vm10, %v195_v59, %v214_v6 }
  0x36   :  { %v232_v15 = vpack.c.bf16 %v229_v11, %v228_v7  ;;  %v234_v16 = vmul.f32 255.0, %v218_v13 }
  0x37   :  { %573 = vmatmul.msk.bf16.vlgmr.msra.gmra.mxu2 %vm257_vm0, %v761_v21  ;;  %v219_v1 = vsel %vm145_vm11, %v196_v2, %v215_v9  ;;  %330 = vmatpush.bf16.msra.mxu1 %v594_v18 }
  0x38   :  { %398 = vmatpush.bf16.msrb.mxu2 %v837_v37  ;;  %387 = vmatpush.bf16.msrb.mxu0 %v232_v15  ;;  %v235_v17 = vmul.f32 255.0, %v219_v1 }
  0x39   :  { %366 = vmatpush.bf16.msra.mxu3 %v594_v18 }
  0x3a   :  { %v238_v8 = vpack.c.bf16 %v235_v17, %v234_v16 }
  0x3b   :  { %574 = vmatmul.msk.bf16.vlgmr.msrb.gmra.mxu0 %vm257_vm0, %v761_v21  ;;  %331 = vmatpush.bf16.msra.mxu1 %v593_v10 }
  0x3c   :  { %422 = vmatpush.bf16.msra.mxu0 %v239_v12  ;;  %399 = vmatpush.bf16.msrb.mxu2 %v845_v47 }
  0x3d   :  { %367 = vmatpush.bf16.msra.mxu3 %v593_v10 }
  0x3f   :  { %332 = vmatpush.bf16.msra.mxu1 %v592_v19 }
  0x40   :  { %423 = vmatpush.bf16.msra.mxu0 %v238_v8  ;;  %400 = vmatpush.bf16.msrb.mxu2 %v596_v43 }
  0x41   :  { %368 = vmatpush.bf16.msra.mxu3 %v592_v19 }
  0x43   :  { %333 = vmatpush.bf16.msra.mxu1 %v591_v20 }
  0x44   :  { %401 = vmatpush.bf16.msrb.mxu2 %v595_v14 }
  0x45   :  { %369 = vmatpush.bf16.msra.mxu3 %v591_v20 }
  0x47   :  { %434 = vmatpush.bf16.msrb.mxu1 %v837_v37 }
  0x48   :  { %402 = vmatpush.bf16.msrb.mxu2 %v594_v18 }
  0x4b   :  { %575 = vmatmul.msk.bf16.vlgmr.msra.gmra.mxu0 %vm257_vm0, %v761_v21  ;;  %435 = vmatpush.bf16.msrb.mxu1 %v845_v47 }
  0x4c   :  { %403 = vmatpush.bf16.msrb.mxu2 %v593_v10 }
  0x4f   :  { %436 = vmatpush.bf16.msrb.mxu1 %v596_v43 }
  0x50   :  { %404 = vmatpush.bf16.msrb.mxu2 %v592_v19 }
  0x53   :  { %437 = vmatpush.bf16.msrb.mxu1 %v595_v14 }
  0x54   :  { %405 = vmatpush.bf16.msrb.mxu2 %v591_v20 }
  0x57   :  { %438 = vmatpush.bf16.msrb.mxu1 %v594_v18 }
  0x5b   :  { %439 = vmatpush.bf16.msrb.mxu1 %v593_v10 }
  0x5f   :  { %440 = vmatpush.bf16.msrb.mxu1 %v592_v19 }
  0x63   :  { %441 = vmatpush.bf16.msrb.mxu1 %v591_v20 }
  0x94   :  { %v270_v21 = vpop.f32.mrf.mxu0 }
  0x9c   :  { %v272_v22 = vpop.f32.mrf.mxu0 }
  0x9d   :  { %v277_v23 = vpack.c.bf16 %v272_v22, %v270_v21 }
  0x9f   :  { %334 = vmatmul.bf16.vlgmr.msra.gmra.mxu1 %v277_v23 }
  0xb8   :  { %v389_v26 = vpop.f32.mrf.mxu0 }
  0xba   :  { %v353_v27 = vpop.f32.mrf.mxu2 }
  0xc0   :  { %v391_v28 = vpop.f32.mrf.mxu0 }
  0xc1   :  { %v397_v29 = vpack.c.bf16 %v391_v28, %v389_v26 }
  0xc2   :  { %v355_v30 = vpop.f32.mrf.mxu2 }
  0xc3   :  { %406 = vmatmul.bf16.vlgmr.msrb.gmra.mxu2 %v397_v29  ;;  %v361_v24 = vpack.c.bf16 %v355_v30, %v353_v27 }
  0xc5   :  { %370 = vmatmul.bf16.vlgmr.msra.gmra.mxu3 %v361_v24 }
  0xc8   :  { %v425_v31 = vpop.f32.mrf.mxu0 }
  0xd0   :  { %v427_v32 = vpop.f32.mrf.mxu0 }
  0xd1   :  { %v433_v33 = vpack.c.bf16 %v427_v32, %v425_v31 }
  0xd3   :  { %442 = vmatmul.bf16.vlgmr.msrb.gmra.mxu1 %v433_v33 }
 0x11c   :  { %v335_v34 = vpop.f32.mrf.mxu1 }
 0x11d   :  { %v457_v36 = vmul.f32 0.003921569, %v335_v34 }
 0x11f   :  { %459 = vst [vmem:[#allocation9] sm:$0xff] %v457_v36 }
 0x124   :  { %v337_v37 = vpop.f32.mrf.mxu1 }
 0x125   :  { %v458_v38 = vmul.f32 0.003921569, %v337_v37 }
 0x127   :  { %460 = vst [vmem:[#allocation9 + $0x8] sm:$0xff] %v458_v38 }
 0x146   :  { %v407_v39 = vpop.f32.mrf.mxu2 }
 0x147   :  { %v476_v40 = vmul.f32 0.007843138, %v407_v39 }
 0x148   :  { %v371_v41 = vpop.f32.mrf.mxu3 }
 0x149   :  { %v580_v42 = vadd.f32 -1.0, %v476_v40  ;;  %v463_v44 = vmul.f32 0.007843138, %v371_v41 }
 0x14b   :  { %v582_v45 = vclamps-f32 %v580_v42, 1.0  ;;  %v576_v46 = vadd.f32 -1.0, %v463_v44 }
 0x14d   :  { %485 = vst [vmem:[#allocation9 + $0x20] sm:$0xff] %v582_v45  ;;  %v578_v47 = vclamps-f32 %v576_v46, 1.0 }
 0x14e   :  { %v409_v48 = vpop.f32.mrf.mxu2 }
 0x14f   :  { %472 = vst [vmem:[#allocation9 + $0x10] sm:$0xff] %v578_v47  ;;  %v477_v25 = vmul.f32 0.007843138, %v409_v48 }
 0x150   :  { %v443_v49 = vpop.f32.mrf.mxu1  ;;  %v373_v50 = vpop.f32.mrf.mxu3 }
 0x151   :  { %v581_v51 = vadd.f32 -1.0, %v477_v25  ;;  %v489_v52 = vmul.f32 0.007843138, %v443_v49  ;;  %v464_v35 = vmul.f32 0.007843138, %v373_v50 }
 0x153   :  { %v583_v53 = vclamps-f32 %v581_v51, 1.0  ;;  %v584_v54 = vadd.f32 -1.0, %v489_v52  ;;  %v577_v55 = vadd.f32 -1.0, %v464_v35 }
 0x155   :  { %486 = vst [vmem:[#allocation9 + $0x28] sm:$0xff] %v583_v53  ;;  %v586_v56 = vclamps-f32 %v584_v54, 1.0  ;;  %v579_v57 = vclamps-f32 %v577_v55, 1.0 }
 0x157   :  { %498 = vst [vmem:[#allocation9 + $0x30] sm:$0xff] %v586_v56 }
 0x158   :  { %473 = vst [vmem:[#allocation9 + $0x18] sm:$0xff] %v579_v57  ;;  %v445_v58 = vpop.f32.mrf.mxu1 }
 0x159   :  { %v490_v59 = vmul.f32 0.007843138, %v445_v58 }
 0x15b   :  { %v585_v60 = vadd.f32 -1.0, %v490_v59 }
 0x15d   :  { %v587_v61 = vclamps-f32 %v585_v60, 1.0 }
 0x15f   :  { %499 = vst [vmem:[#allocation9 + $0x38] sm:$0xff] %v587_v61 }
 0x160   :  { %512 = dma.vmem_to_hbm [thread:$0]  %s505_s2, 1024, %s507_s30, [#allocation5], %s727_s4, %s727_s4, %s728_s5  }
 0x161   :  { %716 = dma.done.wait [#allocation5], 1024  }
 0x162   :  { %717 = vsyncadd [#allocation5], 4294966272 }
 0x163   :  { %517 = vsyncpa [#allocation4], 1 }
 0x164   :  { %518 = vsyncpa [#allocation7], 1 }
 0x165   :  { %519 = vsyncpa [#allocation5], 1 }

</bundles_post_ra>
